<compile_context>
chip_gen: v6e
topology: v6e:2x2x1
jax: 0.10.0
libtpu: 0.0.40
codegen_flags: <defaults>
</compile_context>

<pallas_src>
import functools

import jax
import jax.numpy as jnp
from jax.experimental import pallas as pl
from jax.experimental.pallas import tpu as pltpu


def _repnet_kernel(in_ref, w123_ref, b123_ref, w4_ref, b4_ref, w5_ref, b5_ref, out_ref):
    # h = relu([x|v1|v2] @ block_diag(W2, W1, W3) + [b2|b1|b3])  ==  [hx | hv1 | hv2]
    h = jnp.dot(in_ref[...], w123_ref[...],
                preferred_element_type=jnp.float32) + b123_ref[...]
    h = jnp.maximum(h, 0.0)
    # r = relu(h @ W4 + b4)    (W4 un-split: h is already in torch.cat([x, v1, v2]) order)
    r = jnp.dot(h.astype(w4_ref.dtype), w4_ref[...],
                preferred_element_type=jnp.float32) + b4_ref[...]
    r = jnp.maximum(r, 0.0)
    # r = relu(r @ W5 + b5)
    r = jnp.dot(r.astype(w5_ref.dtype), w5_ref[...],
                preferred_element_type=jnp.float32) + b5_ref[...]
    r = jnp.maximum(r, 0.0)
    out_ref[...] = r.astype(out_ref.dtype)


def init_params(key, x_dim, v_dim, r_dim):
    """Deterministic parameter init (shapes from the module's __init__).
    Weights stored as (in_features, out_features); biases as (1, out_features)."""
    k = r_dim
    dims = [
        ("w1", (v_dim - 3, k)), ("b1", (1, k)),
        ("w2", (x_dim, k)),     ("b2", (1, k)),
        ("w3", (3, k)),         ("b3", (1, k)),
        ("w4", (3 * k, k)),     ("b4", (1, k)),
        ("w5", (k, k)),         ("b5", (1, k)),
    ]
    keys = jax.random.split(key, len(dims))
    params = {}
    for (name, shape), kk in zip(dims, keys):
        fan_in = shape[0] if name.startswith("w") else shape[1]
        bound = 1.0 / jnp.sqrt(jnp.float32(fan_in))
        params[name] = jax.random.uniform(kk, shape, jnp.float32, -bound, bound)
    return params


@functools.partial(jax.jit, static_argnames=("batch_tile", "compute_dtype"))
def representation_forward(x, v, params, *, batch_tile=None, compute_dtype=jnp.float32):
    B, x_dim = x.shape
    v_dim = v.shape[1]
    k = params["w5"].shape[0]
    in_dim = x_dim + v_dim

    # ---- glue: pack input & fuse linear1/2/3 into one block-diagonal matmul ----
    # packed = [x | v1 | v2]  (v = [v1 | v2] already, so one concat suffices)
    packed = jnp.concatenate([x, v], axis=1)
    # Output-block order [hx | hv1 | hv2] matches torch.cat([x, v1, v2], dim=1),
    # so the original (3k, k) W4 can be used unsplit in the kernel.
    w123 = jax.scipy.linalg.block_diag(params["w2"], params["w1"], params["w3"])
    b123 = jnp.concatenate([params["b2"], params["b1"], params["b3"]], axis=1)

    # ---- batch tiling: MXU-sized tiles, zero-pad ragged batches ----
    if batch_tile is None:
        batch_tile = B if B <= 1024 else 512
    n_tiles = -(-B // batch_tile)          # ceil div
    if n_tiles > 1 and batch_tile % 8 != 0:
        batch_tile = ((batch_tile + 7) // 8) * 8   # sublane-align when grid > 1
        n_tiles = -(-B // batch_tile)
    B_pad = n_tiles * batch_tile
    if B_pad != B:
        packed = jnp.pad(packed, ((0, B_pad - B), (0, 0)))

    cd = compute_dtype
    args = (packed.astype(cd),
            w123.astype(cd), b123.astype(jnp.float32),
            params["w4"].astype(cd), params["b4"].astype(jnp.float32),
            params["w5"].astype(cd), params["b5"].astype(jnp.float32))

    def batch_spec(nfeat):
        return pl.BlockSpec((batch_tile, nfeat), lambda i: (i, 0))

    def full_spec(shape):
        return pl.BlockSpec(shape, lambda i: (0, 0))

    in_specs = [
        batch_spec(in_dim),                                   # packed input [x|v1|v2]
        full_spec((in_dim, 3 * k)), full_spec((1, 3 * k)),    # fused linear1/2/3
        full_spec((3 * k, k)),      full_spec((1, k)),        # linear4
        full_spec((k, k)),          full_spec((1, k)),        # linear5
    ]
    out_spec = batch_spec(k)

    out = pl.pallas_call(
        _repnet_kernel,
        out_shape=jax.ShapeDtypeStruct((B_pad, k), jnp.float32),
        grid_spec=pltpu.PrefetchScalarGridSpec(
            num_scalar_prefetch=0,
            grid=(n_tiles,),
            in_specs=in_specs,
            out_specs=out_spec,
        ),
        compiler_params=pltpu.CompilerParams(
            dimension_semantics=("parallel",)),
    )(*args)

    return out[:B] if B_pad != B else out


def _reference_forward(x, v, params):
    """Plain-JAX reference mirroring the PyTorch module exactly."""
    v_dim = v.shape[1]
    v1 = jax.nn.relu(v[:, : v_dim - 3] @ params["w1"] + params["b1"])
    hx = jax.nn.relu(x @ params["w2"] + params["b2"])
    v2 = jax.nn.relu(v[:, v_dim - 3:] @ params["w3"] + params["b3"])
    merge = jnp.concatenate([hx, v1, v2], axis=1)
    r = jax.nn.relu(merge @ params["w4"] + params["b4"])
    r = jax.nn.relu(r @ params["w5"] + params["b5"])
    return r


if __name__ == "__main__":
    # Small shapes consistent with the module: x_dim=16, v_dim=11 (so v_dim-3=8), r_dim=32.
    B, X_DIM, V_DIM, R_DIM = 16, 16, 11, 32

    key = jax.random.PRNGKey(0)
    kx, kv, kp = jax.random.split(key, 3)
    x = jax.random.normal(kx, (B, X_DIM), jnp.float32)
    v = jax.random.normal(kv, (B, V_DIM), jnp.float32)
    params = init_params(kp, X_DIM, V_DIM, R_DIM)

    ref = _reference_forward(x, v, params)

    # f32 path, single-tile grid (batch_tile == B for small batches).
    out = jax.block_until_ready(representation_forward(x, v, params))
    assert out.shape == (B, R_DIM)
    assert jnp.allclose(out, ref, atol=1e-4, rtol=1e-4), "f32 Pallas output mismatch vs reference"

    # bf16 MXU fast path (v6e/v7x), f32 accumulation -> looser tolerance.
    out_bf16 = jax.block_until_ready(
        representation_forward(x, v, params, compute_dtype=jnp.bfloat16))
    assert out_bf16.shape == (B, R_DIM)
    assert jnp.allclose(out_bf16, ref, atol=5e-2, rtol=5e-2), "bf16 Pallas output mismatch"

    # Ragged batch + multi-step parallel grid (exercises padding and tiling path).
    B2 = 1000
    kx2, kv2 = jax.random.split(jax.random.PRNGKey(1))
    x2 = jax.random.normal(kx2, (B2, X_DIM), jnp.float32)
    v2 = jax.random.normal(kv2, (B2, V_DIM), jnp.float32)
    out2 = jax.block_until_ready(
        representation_forward(x2, v2, params, batch_tile=256))
    ref2 = _reference_forward(x2, v2, params)
    assert out2.shape == (B2, R_DIM)
    assert jnp.allclose(out2, ref2, atol=1e-4, rtol=1e-4), "ragged-batch Pallas output mismatch"

    print("KERNEL_OK")
</pallas_src>

<mosaic_0001>
module attributes {stable_mosaic.version = 11 : i64} {
  func.func @_repnet_kernel(%arg0: i32, %arg1: memref<16x27xf32, #tpu.memory_space<vmem>>, %arg2: memref<27x96xf32, #tpu.memory_space<vmem>>, %arg3: memref<1x96xf32, #tpu.memory_space<vmem>>, %arg4: memref<96x32xf32, #tpu.memory_space<vmem>>, %arg5: memref<1x32xf32, #tpu.memory_space<vmem>>, %arg6: memref<32x32xf32, #tpu.memory_space<vmem>>, %arg7: memref<1x32xf32, #tpu.memory_space<vmem>>, %arg8: memref<16x32xf32, #tpu.memory_space<vmem>>) attributes {dimension_semantics = [#tpu.dimension_semantics<parallel>], iteration_bounds = array<i64: 1>, scalar_prefetch = 0 : i64, scratch_operands = 0 : i64, tpu.core_type = #tpu.core_type<tc>, window_params = [{transform_indices = @transform_0, window_bounds = array<i64: 16, 27>}, {pipeline_mode = #tpu.pipeline_mode<synchronous>, transform_indices = @transform_1, window_bounds = array<i64: 27, 96>}, {pipeline_mode = #tpu.pipeline_mode<synchronous>, transform_indices = @transform_2, window_bounds = array<i64: 1, 96>}, {pipeline_mode = #tpu.pipeline_mode<synchronous>, transform_indices = @transform_3, window_bounds = array<i64: 96, 32>}, {pipeline_mode = #tpu.pipeline_mode<synchronous>, transform_indices = @transform_4, window_bounds = array<i64: 1, 32>}, {pipeline_mode = #tpu.pipeline_mode<synchronous>, transform_indices = @transform_5, window_bounds = array<i64: 32, 32>}, {pipeline_mode = #tpu.pipeline_mode<synchronous>, transform_indices = @transform_6, window_bounds = array<i64: 1, 32>}, {transform_indices = @transform_7, window_bounds = array<i64: 16, 32>}]} {
    %c0 = arith.constant 0 : index
    %c0_0 = arith.constant 0 : index
    %0 = vector.load %arg1[%c0, %c0_0] : memref<16x27xf32, #tpu.memory_space<vmem>>, vector<16x27xf32>
    %c0_1 = arith.constant 0 : index
    %c0_2 = arith.constant 0 : index
    %1 = vector.load %arg2[%c0_1, %c0_2] : memref<27x96xf32, #tpu.memory_space<vmem>>, vector<27x96xf32>
    %cst = arith.constant dense<0.000000e+00> : vector<16x96xf32>
    %2 = tpu.matmul %0, %1, %cst {dimension_numbers = #tpu.dot_dimension_numbers<[1], [0], [0], [1], [0, 0, 1, 1], [], []>} : vector<16x27xf32>, vector<27x96xf32>, vector<16x96xf32> -> vector<16x96xf32>
    %c0_3 = arith.constant 0 : index
    %c0_4 = arith.constant 0 : index
    %3 = vector.load %arg3[%c0_3, %c0_4] : memref<1x96xf32, #tpu.memory_space<vmem>>, vector<1x96xf32>
    %4 = vector.broadcast %3 : vector<1x96xf32> to vector<16x96xf32>
    %5 = arith.addf %2, %4 : vector<16x96xf32>
    %cst_5 = arith.constant 0.000000e+00 : f32
    %6 = vector.broadcast %cst_5 : f32 to vector<16x96xf32>
    %7 = arith.maximumf %5, %6 : vector<16x96xf32>
    %c0_6 = arith.constant 0 : index
    %c0_7 = arith.constant 0 : index
    %8 = vector.load %arg4[%c0_6, %c0_7] : memref<96x32xf32, #tpu.memory_space<vmem>>, vector<96x32xf32>
    %cst_8 = arith.constant dense<0.000000e+00> : vector<16x32xf32>
    %9 = tpu.matmul %7, %8, %cst_8 {dimension_numbers = #tpu.dot_dimension_numbers<[1], [0], [0], [1], [0, 0, 1, 1], [], []>} : vector<16x96xf32>, vector<96x32xf32>, vector<16x32xf32> -> vector<16x32xf32>
    %c0_9 = arith.constant 0 : index
    %c0_10 = arith.constant 0 : index
    %10 = vector.load %arg5[%c0_9, %c0_10] : memref<1x32xf32, #tpu.memory_space<vmem>>, vector<1x32xf32>
    %11 = vector.broadcast %10 : vector<1x32xf32> to vector<16x32xf32>
    %12 = arith.addf %9, %11 : vector<16x32xf32>
    %cst_11 = arith.constant 0.000000e+00 : f32
    %13 = vector.broadcast %cst_11 : f32 to vector<16x32xf32>
    %14 = arith.maximumf %12, %13 : vector<16x32xf32>
    %c0_12 = arith.constant 0 : index
    %c0_13 = arith.constant 0 : index
    %15 = vector.load %arg6[%c0_12, %c0_13] : memref<32x32xf32, #tpu.memory_space<vmem>>, vector<32x32xf32>
    %cst_14 = arith.constant dense<0.000000e+00> : vector<16x32xf32>
    %16 = tpu.matmul %14, %15, %cst_14 {dimension_numbers = #tpu.dot_dimension_numbers<[1], [0], [0], [1], [0, 0, 1, 1], [], []>} : vector<16x32xf32>, vector<32x32xf32>, vector<16x32xf32> -> vector<16x32xf32>
    %c0_15 = arith.constant 0 : index
    %c0_16 = arith.constant 0 : index
    %17 = vector.load %arg7[%c0_15, %c0_16] : memref<1x32xf32, #tpu.memory_space<vmem>>, vector<1x32xf32>
    %18 = vector.broadcast %17 : vector<1x32xf32> to vector<16x32xf32>
    %19 = arith.addf %16, %18 : vector<16x32xf32>
    %cst_17 = arith.constant 0.000000e+00 : f32
    %20 = vector.broadcast %cst_17 : f32 to vector<16x32xf32>
    %21 = arith.maximumf %19, %20 : vector<16x32xf32>
    %c0_18 = arith.constant 0 : index
    %c0_19 = arith.constant 0 : index
    %22 = vector.load %arg8[%c0_18, %c0_19] : memref<16x32xf32, #tpu.memory_space<vmem>>, vector<16x32xf32>
    tpu.vector_store %arg8[%c0_18, %c0_19], %21 {strides = array<i32>} : memref<16x32xf32, #tpu.memory_space<vmem>>, vector<16x32xf32>,
    return
  }
  func.func @transform_0(%arg0: i32) -> (i32, i32) {
    %c0_i32 = arith.constant 0 : i32
    %c0_i32_0 = arith.constant 0 : i32
    return %arg0, %c0_i32 : i32, i32
  }
  func.func @transform_1(%arg0: i32) -> (i32, i32) {
    %c0_i32 = arith.constant 0 : i32
    %c0_i32_0 = arith.constant 0 : i32
    %c0_i32_1 = arith.constant 0 : i32
    return %c0_i32, %c0_i32_0 : i32, i32
  }
  func.func @transform_2(%arg0: i32) -> (i32, i32) {
    %c0_i32 = arith.constant 0 : i32
    %c0_i32_0 = arith.constant 0 : i32
    %c0_i32_1 = arith.constant 0 : i32
    return %c0_i32, %c0_i32_0 : i32, i32
  }
  func.func @transform_3(%arg0: i32) -> (i32, i32) {
    %c0_i32 = arith.constant 0 : i32
    %c0_i32_0 = arith.constant 0 : i32
    %c0_i32_1 = arith.constant 0 : i32
    return %c0_i32, %c0_i32_0 : i32, i32
  }
  func.func @transform_4(%arg0: i32) -> (i32, i32) {
    %c0_i32 = arith.constant 0 : i32
    %c0_i32_0 = arith.constant 0 : i32
    %c0_i32_1 = arith.constant 0 : i32
    return %c0_i32, %c0_i32_0 : i32, i32
  }
  func.func @transform_5(%arg0: i32) -> (i32, i32) {
    %c0_i32 = arith.constant 0 : i32
    %c0_i32_0 = arith.constant 0 : i32
    %c0_i32_1 = arith.constant 0 : i32
    return %c0_i32, %c0_i32_0 : i32, i32
  }
  func.func @transform_6(%arg0: i32) -> (i32, i32) {
    %c0_i32 = arith.constant 0 : i32
    %c0_i32_0 = arith.constant 0 : i32
    %c0_i32_1 = arith.constant 0 : i32
    return %c0_i32, %c0_i32_0 : i32, i32
  }
  func.func @transform_7(%arg0: i32) -> (i32, i32) {
    %c0_i32 = arith.constant 0 : i32
    %c0_i32_0 = arith.constant 0 : i32
    return %arg0, %c0_i32 : i32, i32
  }
}

</mosaic_0001>

<bundles_post_ra>
// kernel: representation_forward.1
= control target key start
LH: loop header
LB: loop body
LE: loop exit
PB: predicated region body
PF: predicated region fallthrough
CT: control target
= control target key end

     0   :  { %vm47_vm0 = vcmask 1042432   ;;  %vm40_vm1 = vcmask 220160   ;;  %s581_s0 = inlined_call_operand.vmem [shape: f32[16,27], index: 0, kind: input, shape index: {}]   ;;  %s582_s1 = inlined_call_operand.vmem [shape: f32[27,96], index: 1, kind: input, shape index: {}]   ;;  %s583_s2 = inlined_call_operand.vmem [shape: f32[1,96], index: 2, kind: input, shape index: {}]   ;;  %s584_s3 = inlined_call_operand.vmem [shape: f32[96,32], index: 3, kind: input, shape index: {}]   ;;  %s585_s4 = inlined_call_operand.vmem [shape: f32[1,32], index: 4, kind: input, shape index: {}]   ;;  %s586_s5 = inlined_call_operand.vmem [shape: f32[32,32], index: 5, kind: input, shape index: {}]   ;;  %s587_s6 = inlined_call_operand.vmem [shape: f32[1,32], index: 6, kind: input, shape index: {}]   ;;  %s588_s7 = inlined_call_operand.hbm [shape: f32[16,32], index: 7, kind: output, shape index: {}]  }
   0x1   :  { %v32_v0 = vld [vmem:[%s582_s1 + $0x18] sm:$0x7]  ;;  %v31_v1 = vld [vmem:[%s582_s1 + $0x10] sm:$0xff]  ;;  %v27_v2 = vld [vmem:[%s581_s0] sm:$0xff] }
   0x2   :  { %380 = vmatprep.subr.msk.mxu0 %vm47_vm0, %v32_v0  ;;  %v30_v3 = vld [vmem:[%s582_s1 + $0x8] sm:$0xff]  ;;  %388 = vmatprep.mubr.msk.f32.mxu0 %vm40_vm1, %v27_v2  ;;  %v139_v4 = vld [vmem:[%s584_s3 + $0x58] sm:$0xff]  ;;  %v138_v5 = vld [vmem:[%s584_s3 + $0x50] sm:$0xff] }
   0x3   :  { %381 = vmatpush3.msk.msra.mxu0 %vm47_vm0, %v32_v0  ;;  %391 = vmatprep.subr.mxu1 %v139_v4  ;;  %v29_v6 = vld [vmem:[%s582_s1] sm:$0xff]  ;;  %v137_v7 = vld [vmem:[%s584_s3 + $0x48] sm:$0xff] }
   0x4   :  { %382 = vmatprep.subr.mxu0 %v31_v1  ;;  %392 = vmatpush3.msra.mxu1 %v139_v4 }
   0x5   :  { %383 = vmatpush3.msra.mxu0 %v31_v1 }
   0x6   :  { %12 = vsyncpa [#allocation3], 0  ;;  %384 = vmatprep.subr.mxu0 %v30_v3  ;;  %393 = vmatprep.subr.mxu1 %v138_v5  ;;  %v28_v8 = vld [vmem:[%s581_s0 + $0x8] sm:$0xff]  ;;  %v136_v9 = vld [vmem:[%s584_s3 + $0x40] sm:$0xff]  ;;  %vm147_vm2 = vcmask 785408   ;;  %vm242_vm3 = vcmask 261120  }
   0x7   :  { %385 = vmatpush3.msra.mxu0 %v30_v3  ;;  %394 = vmatpush3.msra.mxu1 %v138_v5  ;;  %v135_v10 = vld [vmem:[%s584_s3 + $0x38] sm:$0xff]  ;;  %v134_v11 = vld [vmem:[%s584_s3 + $0x30] sm:$0xff]  ;;  %v133_v12 = vld [vmem:[%s584_s3 + $0x28] sm:$0xff] }
   0x8   :  { %386 = vmatprep.subr.mxu0 %v29_v6  ;;  %395 = vmatprep.subr.mxu1 %v137_v7  ;;  %v132_v13 = vld [vmem:[%s584_s3 + $0x20] sm:$0xff]  ;;  %v131_v14 = vld [vmem:[%s584_s3 + $0x18] sm:$0xff]  ;;  %v130_v15 = vld [vmem:[%s584_s3 + $0x10] sm:$0xff] }
   0x9   :  { %387 = vmatpush3.msra.mxu0 %v29_v6  ;;  %396 = vmatpush3.msra.mxu1 %v137_v7  ;;  %v129_v16 = vld [vmem:[%s584_s3 + $0x8] sm:$0xff]  ;;  %v128_v17 = vld [vmem:[%s584_s3] sm:$0xff]  ;;  %v234_v25 = vld [vmem:[%s586_s5 + $0x18] sm:$0xff] }
   0xa   :  { %389 = vmatmul.mubr.msk.f32.vlgmr.msra.gmra.mxu0 %vm40_vm1, %v28_v8  ;;  %397 = vmatprep.subr.mxu1 %v136_v9  ;;  %v344_v18 = vld [vmem:[%s583_s2] ss:$0 sm:$0xff]  ;;  %v233_v26 = vld [vmem:[%s586_s5 + $0x10] sm:$0xff]  ;;  %v232_v27 = vld [vmem:[%s586_s5 + $0x8] sm:$0xff] }
   0xb   :  { %398 = vmatpush3.msra.mxu1 %v136_v9  ;;  %418 = vmatprep.subr.mxu0 %v234_v25  ;;  %v231_v28 = vld [vmem:[%s586_s5] sm:$0xff]  ;;  %s454_s5 = smov [#allocation2]  }
   0xc   :  { %399 = vmatprep.subr.mxu1 %v135_v10  ;;  %419 = vmatpush3.msra.mxu0 %v234_v25  ;;  %v348_v29 = vld [vmem:[%s585_s4] ss:$0 sm:$0xff]  ;;  %s333_s23 = sshll.u32 %s454_s5, 4  ;;  %s334_s23 = int_to_ptr.vmem [resolvable:$true] %s333_s23 }
   0xd   :  { %400 = vmatpush3.msra.mxu1 %v135_v10  ;;  %420 = vmatprep.subr.mxu0 %v233_v26  ;;  %v351_v36 = vld [vmem:[%s587_s6] ss:$0 sm:$0xff]  ;;  %s432_s4 = scalar_lea.vmem %s334_s23, 256  ;;  %p437_p1 = scmp.lt.s32.totalorder %s334_s23, %s334_s23 }
   0xe   :  { %401 = vmatprep.subr.mxu1 %v134_v11  ;;  %421 = vmatpush3.msra.mxu0 %v233_v26  ;;  %p433_p0 = scmp.ne.s32.totalorder %s334_s23, %s432_s4  ;;  %p438_p2 = scmp.lt.s32.totalorder %s432_s4, %s432_s4 }
   0xf   :  { %402 = vmatpush3.msra.mxu1 %v134_v11  ;;  %422 = vmatprep.subr.mxu0 %v232_v27 }
  0x10   :  { %403 = vmatprep.subr.mxu1 %v133_v12  ;;  %423 = vmatpush3.msra.mxu0 %v232_v27  ;;  %p439_p3 = por %p438_p2, %p437_p1 }
  0x11   :  { %404 = vmatpush3.msra.mxu1 %v133_v12  ;;  %424 = vmatprep.subr.mxu0 %v231_v28 }
  0x12   :  { %405 = vmatprep.subr.mxu1 %v132_v13  ;;  %425 = vmatpush3.msra.mxu0 %v231_v28  ;;  %p440_p4 = pnand %p439_p3, %p433_p0 }
  0x13   :  { %406 = vmatpush3.msra.mxu1 %v132_v13 }
  0x14   :  { %407 = vmatprep.subr.mxu1 %v131_v14 }
  0x15   :  { %408 = vmatpush3.msra.mxu1 %v131_v14 }
  0x16   :  { %409 = vmatprep.subr.mxu1 %v130_v15 }
  0x17   :  { %410 = vmatpush3.msra.mxu1 %v130_v15 }
  0x18   :  { %411 = vmatprep.subr.mxu1 %v129_v16 }
  0x19   :  { %412 = vmatpush3.msra.mxu1 %v129_v16 }
  0x1a   :  { %413 = vmatprep.subr.mxu1 %v128_v17 }
  0x1b   :  { %414 = vmatpush3.msra.mxu1 %v128_v17 }
  0xca   :  { %v390_v19 = vpop.f32.mrf.mxu0 }
  0xcb   :  { %v123_v20 = vadd.f32 %v390_v19, %v344_v18 }
  0xcc   :  { %v117_v21 = vpop.f32.mrf.mxu0 }
  0xcd   :  { %v118_v22 = vadd.f32 %v344_v18, %v117_v21  ;;  %v127_v24 = vmax.f32 %v123_v20, 0.0 }
  0xcf   :  { %v126_v23 = vmax.f32 %v118_v22, 0.0 }
  0xd1   :  { %415 = vmatprep.mubr.msk.f32.mxu1 %vm147_vm2, %v126_v23 }
  0xd2   :  { %416 = vmatmul.mubr.msk.f32.vlgmr.msra.gmra.mxu1 %vm147_vm2, %v127_v24 }
 0x192   :  { %v417_v30 = vpop.f32.mrf.mxu1 }
 0x193   :  { %v226_v31 = vadd.f32 %v417_v30, %v348_v29 }
 0x194   :  { %v220_v32 = vpop.f32.mrf.mxu1 }
 0x195   :  { %v221_v33 = vadd.f32 %v348_v29, %v220_v32  ;;  %v230_v35 = vmax.f32 %v226_v31, 0.0 }
 0x197   :  { %v229_v34 = vmax.f32 %v221_v33, 0.0 }
 0x199   :  { %426 = vmatprep.mubr.msk.f32.mxu0 %vm242_vm3, %v229_v34 }
 0x19a   :  { %427 = vmatmul.mubr.msk.f32.vlgmr.msra.gmra.mxu0 %vm242_vm3, %v230_v35 }
 0x25a   :  { %v428_v37 = vpop.f32.mrf.mxu0 }
 0x25b   :  { %v321_v38 = vadd.f32 %v428_v37, %v351_v36 }
 0x25c   :  { %v315_v39 = vpop.f32.mrf.mxu0 }
 0x25d   :  { %v325_v40 = vmax.f32 %v321_v38, 0.0  ;;  %v316_v41 = vadd.f32 %v351_v36, %v315_v39 }
 0x25f   :  { %327 = vst.msk [vmem:[#allocation2 + $0x8] sm:$0xff] %vm242_vm3, %v325_v40  ;;  %v324_v42 = vmax.f32 %v316_v41, 0.0 }
 0x261   :  { %326 = vst.msk [vmem:[#allocation2] sm:$0xff] %vm242_vm3, %v324_v42 }
 0x262   :  { %443 = shalt.err (!%p440_p4)
}
 0x263   :  { %s455_s6 = smov 128   ;;  %s456_s0 = smov 8  }
 0x264   :  { %339 = dma.vmem_to_hbm [thread:$0]  %s334_s23, 256, %s588_s7, [#allocation3], %s455_s6, %s455_s6, %s456_s0  }
 0x265   :  { %452 = dma.done.wait [#allocation3], 256  }
 0x266   :  { %453 = vsyncadd [#allocation3], 4294967040 }
 0x267   :  { %343 = vsyncpa [#allocation3], 1 }

</bundles_post_ra>
